<compile_context>
chip_gen: v7x
topology: tpu7x:2x2x1
jax: 0.10.0
libtpu: 0.0.40
codegen_flags: <defaults>
</compile_context>

<pallas_src>
import functools

import jax
import jax.numpy as jnp
from jax.experimental import pallas as pl
from jax.experimental.pallas import tpu as pltpu

_NEG_MASK = -1e30  # bias for padded action lanes -> argmax over padded Q is safe


def _round_up(n, m):
    return ((n + m - 1) // m) * m


def _dqn_mlp_kernel(x_ref, w1_ref, w2_ref, out_ref):
    # x:  (B, D) float32            activations (cast to bf16 in-kernel)
    # w1: (round_up(D+1,8), H) bf16 rows [0,D) = W1^T, row D = b1, rest zeros
    # w2: (round_up(H+1,8), Ap) bf16 rows [0,H) = W2^T (lane-padded),
    #                               row H = [b2 | -1e30 for padded lanes]
    d = x_ref.shape[1]
    hidden = w1_ref.shape[1]

    x = x_ref[...].astype(w1_ref.dtype)  # bf16 MXU operands

    # fc1: bf16 MXU, f32 accumulate; bias add + ReLU in f32 on the VPU.
    h = jnp.dot(x, w1_ref[:d, :], preferred_element_type=jnp.float32)
    h = h + w1_ref[d:d + 1, :].astype(jnp.float32)
    h = jnp.maximum(h, 0.0)

    # fc2: lane-dense output (last dim = 128-padded action dim) -> full vst.
    q = jnp.dot(h.astype(w2_ref.dtype), w2_ref[:hidden, :],
                preferred_element_type=jnp.float32)
    q = q + w2_ref[hidden:hidden + 1, :].astype(jnp.float32)
    out_ref[...] = q.astype(out_ref.dtype)


def prepare_params(w1, b1, w2, b2, dtype=jnp.bfloat16):
    """One-time prep of PyTorch-layout nn.Linear params for the kernel.

    w1: (hidden, input_dims), b1: (hidden,)
    w2: (n_actions, hidden),  b2: (n_actions,)
    Returns (bf16 by default):
      w1_aug: (round_up(input_dims+1, 8), hidden)   [W1^T ; b1 ; 0-pad]
      w2_aug: (round_up(hidden+1, 8), A_pad=128k)   [W2^T ; b2 ; 0-pad],
              lane-padded; padded lanes of the bias row are -1e30.
    """
    hidden, in_dims = w1.shape
    n_actions = w2.shape[0]
    a_pad = _round_up(max(n_actions, 128), 128)

    rows1 = _round_up(in_dims + 1, 8)
    w1_aug = jnp.zeros((rows1, hidden), jnp.float32)
    w1_aug = w1_aug.at[:in_dims, :].set(jnp.transpose(w1).astype(jnp.float32))
    w1_aug = w1_aug.at[in_dims, :].set(b1.astype(jnp.float32))

    rows2 = _round_up(hidden + 1, 8)
    w2_aug = jnp.zeros((rows2, a_pad), jnp.float32)
    w2_aug = w2_aug.at[:hidden, :n_actions].set(
        jnp.transpose(w2).astype(jnp.float32))
    w2_aug = w2_aug.at[hidden, :n_actions].set(b2.astype(jnp.float32))
    w2_aug = w2_aug.at[hidden, n_actions:].set(_NEG_MASK)
    return w1_aug.astype(dtype), w2_aug.astype(dtype)


@jax.jit
def linear_dqn_forward(state, w1_aug, w2_aug):
    """Per-step forward: relu(state @ W1^T + b1) @ W2^T + b2.

    Returns the lane-padded Q block of shape (B, A_pad).  Real actions live in
    lanes [0, n_actions); padded lanes are ~-1e30, so jnp.argmax over the full
    padded block picks a real action (no post-kernel slice needed).
    """
    b, d = state.shape
    hidden = w1_aug.shape[1]
    a_pad = w2_aug.shape[1]
    return pl.pallas_call(
        _dqn_mlp_kernel,
        out_shape=jax.ShapeDtypeStruct((b, a_pad), jnp.float32),
        in_specs=[
            pl.BlockSpec(memory_space=pltpu.MemorySpace.VMEM),
            pl.BlockSpec(memory_space=pltpu.MemorySpace.VMEM),
            pl.BlockSpec(memory_space=pltpu.MemorySpace.VMEM),
        ],
        out_specs=pl.BlockSpec(memory_space=pltpu.MemorySpace.VMEM),
        cost_estimate=pl.CostEstimate(
            flops=2 * b * (d * hidden + hidden * a_pad),
            transcendentals=0,
            bytes_accessed=(4 * state.size + 2 * w1_aug.size + 2 * w2_aug.size
                            + 4 * b * a_pad),
        ),
    )(state, w1_aug, w2_aug)


@functools.partial(jax.jit, static_argnames=("block_b",))
def linear_dqn_forward_rollout(states, w1_aug, w2_aug, *, block_b=128):
    """Batched forward over a stack of states (rollout / replay batch).

    1-D grid over the batch axis; both weight BlockSpecs always map to block
    (0, 0), so the bf16 weight matrices are DMA'd once and stay VMEM-resident
    across every grid step (amortizes launch + DMA overhead).
    """
    n, d = states.shape
    a_pad = w2_aug.shape[1]
    block_b = min(block_b, n)
    grid = (pl.cdiv(n, block_b),)
    return pl.pallas_call(
        _dqn_mlp_kernel,
        out_shape=jax.ShapeDtypeStruct((n, a_pad), jnp.float32),
        grid_spec=pltpu.PrefetchScalarGridSpec(
            num_scalar_prefetch=0,
            grid=grid,
            in_specs=[
                pl.BlockSpec((block_b, d), lambda i: (i, 0)),
                pl.BlockSpec(w1_aug.shape, lambda i: (0, 0)),  # VMEM-resident
                pl.BlockSpec(w2_aug.shape, lambda i: (0, 0)),  # VMEM-resident
            ],
            out_specs=pl.BlockSpec((block_b, a_pad), lambda i: (i, 0)),
        ),
        compiler_params=pltpu.CompilerParams(
            dimension_semantics=("parallel",)),
    )(states, w1_aug, w2_aug)


if __name__ == "__main__":
    # CartPole-v1: observation dim = 4, n_actions = 2.
    batch, input_dims, n_actions, hidden = 8, 4, 2, 128

    key = jax.random.PRNGKey(0)
    kx, kr, k1, k2, k3, k4 = jax.random.split(key, 6)

    lim1 = 1.0 / (input_dims ** 0.5)
    lim2 = 1.0 / (hidden ** 0.5)
    # PyTorch nn.Linear layout: weight is (out_features, in_features).
    w1 = jax.random.uniform(k1, (hidden, input_dims), jnp.float32, -lim1, lim1)
    b1 = jax.random.uniform(k2, (hidden,), jnp.float32, -lim1, lim1)
    w2 = jax.random.uniform(k3, (n_actions, hidden), jnp.float32, -lim2, lim2)
    b2 = jax.random.uniform(k4, (n_actions,), jnp.float32, -lim2, lim2)

    # One-time parameter preparation (hoisted out of the per-step forward).
    w1_aug, w2_aug = prepare_params(w1, b1, w2, b2)
    a_pad = w2_aug.shape[1]

    # --- Per-step forward: one gridless pallas_call, no post-kernel slice. ---
    state = jax.random.normal(kx, (batch, input_dims), jnp.float32)
    q_pad = jax.block_until_ready(linear_dqn_forward(state, w1_aug, w2_aug))

    ref = jnp.maximum(state @ w1.T + b1, 0.0) @ w2.T + b2
    assert q_pad.shape == (batch, a_pad)
    # bf16 operands with f32 accumulation -> relaxed tolerance vs. f32 ref.
    assert jnp.allclose(q_pad[:, :n_actions], ref, atol=2e-2, rtol=2e-2)
    # Padded lanes are masked to -1e30: greedy action over the padded block
    # matches greedy action over the real n_actions lanes.
    assert jnp.array_equal(jnp.argmax(q_pad, axis=1),
                           jnp.argmax(q_pad[:, :n_actions], axis=1))

    # --- Rollout / replay-batch forward: batch grid, weights VMEM-resident. --
    t_steps = 256
    states = jax.random.normal(kr, (t_steps, input_dims), jnp.float32)
    q_roll = jax.block_until_ready(
        linear_dqn_forward_rollout(states, w1_aug, w2_aug, block_b=128))
    ref_roll = jnp.maximum(states @ w1.T + b1, 0.0) @ w2.T + b2
    assert q_roll.shape == (t_steps, a_pad)
    assert jnp.allclose(q_roll[:, :n_actions], ref_roll, atol=2e-2, rtol=2e-2)

    print("KERNEL_OK")
</pallas_src>

<mosaic_0001>
module attributes {stable_mosaic.version = 11 : i64} {
  func.func @_dqn_mlp_kernel(%arg0: memref<8x4xf32, #tpu.memory_space<vmem>>, %arg1: memref<8x128xbf16, #tpu.memory_space<vmem>>, %arg2: memref<136x128xbf16, #tpu.memory_space<vmem>>, %arg3: memref<8x128xf32, #tpu.memory_space<vmem>>) attributes {dimension_semantics = [], scalar_prefetch = 0 : i64, scratch_operands = 0 : i64, tpu.core_type = #tpu.core_type<tc>} {
    %c0 = arith.constant 0 : index
    %c0_0 = arith.constant 0 : index
    %0 = vector.load %arg0[%c0, %c0_0] : memref<8x4xf32, #tpu.memory_space<vmem>>, vector<8x4xf32>
    %1 = arith.truncf %0 : vector<8x4xf32> to vector<8x4xbf16>
    %c0_1 = arith.constant 0 : index
    %c0_2 = arith.constant 0 : index
    %2 = vector.load %arg1[%c0_1, %c0_2] : memref<8x128xbf16, #tpu.memory_space<vmem>>, vector<4x128xbf16>
    %cst = arith.constant dense<0.000000e+00> : vector<8x128xf32>
    %3 = tpu.matmul %1, %2, %cst {dimension_numbers = #tpu.dot_dimension_numbers<[1], [0], [0], [1], [0, 0, 1, 1], [], []>} : vector<8x4xbf16>, vector<4x128xbf16>, vector<8x128xf32> -> vector<8x128xf32>
    %c4 = arith.constant 4 : index
    %c0_3 = arith.constant 0 : index
    %4 = vector.load %arg1[%c4, %c0_3] : memref<8x128xbf16, #tpu.memory_space<vmem>>, vector<1x128xbf16>
    %5 = arith.extf %4 : vector<1x128xbf16> to vector<1x128xf32>
    %6 = vector.broadcast %5 : vector<1x128xf32> to vector<8x128xf32>
    %7 = arith.addf %3, %6 : vector<8x128xf32>
    %cst_4 = arith.constant 0.000000e+00 : f32
    %8 = vector.broadcast %cst_4 : f32 to vector<8x128xf32>
    %9 = arith.maximumf %7, %8 : vector<8x128xf32>
    %10 = arith.truncf %9 : vector<8x128xf32> to vector<8x128xbf16>
    %c0_5 = arith.constant 0 : index
    %c0_6 = arith.constant 0 : index
    %11 = vector.load %arg2[%c0_5, %c0_6] : memref<136x128xbf16, #tpu.memory_space<vmem>>, vector<128x128xbf16>
    %cst_7 = arith.constant dense<0.000000e+00> : vector<8x128xf32>
    %12 = tpu.matmul %10, %11, %cst_7 {dimension_numbers = #tpu.dot_dimension_numbers<[1], [0], [0], [1], [0, 0, 1, 1], [], []>} : vector<8x128xbf16>, vector<128x128xbf16>, vector<8x128xf32> -> vector<8x128xf32>
    %c128 = arith.constant 128 : index
    %c0_8 = arith.constant 0 : index
    %13 = vector.load %arg2[%c128, %c0_8] : memref<136x128xbf16, #tpu.memory_space<vmem>>, vector<1x128xbf16>
    %14 = arith.extf %13 : vector<1x128xbf16> to vector<1x128xf32>
    %15 = vector.broadcast %14 : vector<1x128xf32> to vector<8x128xf32>
    %16 = arith.addf %12, %15 : vector<8x128xf32>
    %c0_9 = arith.constant 0 : index
    %c0_10 = arith.constant 0 : index
    %17 = vector.load %arg3[%c0_9, %c0_10] : memref<8x128xf32, #tpu.memory_space<vmem>>, vector<8x128xf32>
    tpu.vector_store %arg3[%c0_9, %c0_10], %16 {strides = array<i32>} : memref<8x128xf32, #tpu.memory_space<vmem>>, vector<8x128xf32>,
    return
  }
}

</mosaic_0001>

<bundles_post_ra>
// kernel: linear_dqn_forward.1
= control target key start
LH: loop header
LB: loop body
LE: loop exit
PB: predicated region body
PF: predicated region fallthrough
CT: control target
= control target key end

     0   :  { %8 = vsyncpa [#allocation3], 0  ;;  %s382_s0 = inlined_call_operand.vmem [shape: f32[8,4], index: 0, kind: input, shape index: {}]   ;;  %s383_s1 = inlined_call_operand.vmem [shape: bf16[8,128], index: 1, kind: input, shape index: {}]   ;;  %s384_s2 = inlined_call_operand.hbm [shape: bf16[136,128], index: 2, kind: input, shape index: {}]   ;;  %s385_s3 = inlined_call_operand.hbm [shape: f32[8,128], index: 3, kind: output, shape index: {}]  }
   0x1   :  { %9 = vsyncpa [#allocation4], 0  ;;  %s323_s12 = smov [#allocation2]   ;;  %s275_s16 = scalar_lea.hbm %s384_s2, 1088 }
   0x2   :  { %s19_s13 = sshll.u32 %s323_s12, 4  ;;  %p276_p0 = scmp.ne.s32.totalorder %s384_s2, %s275_s16  ;;  %s20_s13 = int_to_ptr.vmem [resolvable:$true] %s19_s13 }
   0x3   :  { %p279_p1 = scmp.lt.u32.totalorder %s275_s16, %s384_s2 }
   0x5   :  { %p281_p2 = pnand %p279_p1, %p276_p0 }
   0x7   :  { %284 = shalt.err (!%p281_p2)
}
   0x8   :  { %s285_s21 = scalar_lea.vmem %s20_s13, 1088  ;;  %p290_p4 = scmp.lt.s32.totalorder %s20_s13, %s20_s13 }
   0x9   :  { %p286_p3 = scmp.ne.s32.totalorder %s20_s13, %s285_s21  ;;  %p291_p5 = scmp.lt.s32.totalorder %s285_s21, %s285_s21 }
   0xb   :  { %p292_p6 = por %p291_p5, %p290_p4 }
   0xd   :  { %p293_p7 = pnand %p292_p6, %p286_p3 }
   0xf   :  { %296 = shalt.err (!%p293_p7)
}
  0x10   :  { %s324_s22 = smov 64   ;;  %s325_s23 = smov 4  }
  0x11   :  { %25 = dma.hbm_to_vmem [thread:$0]  %s384_s2, 1088, %s20_s13, [#allocation3], %s324_s22, %s324_s22, %s325_s23  }
  0x12   :  { %319 = dma.done.wait [#allocation3], 1088  }
  0x13   :  { %320 = vsyncadd [#allocation3], 4294966208  ;;  %v326_v0 = vmov 0.0   ;;  %vm327_vm0 = vmmov 0   ;;  %vm43_vm1 = vcmask 1041408   ;;  %v30_v2 = vld [vmem:[%s382_s0] sm:$0xff]  ;;  %v35_v13 = vlaneseq }
  0x14   :  { %235 = vmatprep.subr.bf16.mxu0 %v326_v0  ;;  %237 = vmatprep.mubr.msk.bf16.mxu0 %vm327_vm0, %v326_v0  ;;  %v32_v1 = vld [vmem:[%s383_s1] sm:$0x3]  ;;  %v31_v4 = vpack.c.bf16 %v30_v2, %v30_v2  ;;  %v267_v5 = vld [vmem:[#allocation2] sm:$0xff]   ;;  %vm39_vm2 = vcmask 31744   ;;  %v268_v6 = vld [vmem:[#allocation2 + $0x8] sm:$0xff]   ;;  %s328_s30 = smov [#allocation5]  }
  0x15   :  { %241 = vmatprep.subr.bf16.mxu1 %v326_v0  ;;  %257 = vmatprep.mubr.msk.bf16.mxu1 %vm327_vm0, %v326_v0  ;;  %v45_v3 = vsel %vm43_vm1, %v32_v1, 0  ;;  %v269_v7 = vld [vmem:[#allocation2 + $0x10] sm:$0xff]   ;;  %v270_v8 = vld [vmem:[#allocation2 + $0x18] sm:$0xff]   ;;  %v271_v9 = vld [vmem:[#allocation2 + $0x20] sm:$0xff]   ;;  %v36_v14 = vshrl.u32 %v35_v13, 7  ;;  %s206_s4 = sshll.u32 %s328_s30, 4  ;;  %s207_s4 = int_to_ptr.vmem [resolvable:$true] %s206_s4 }
  0x16   :  { %236 = vmatpush3.bf16.msra.mxu0 %v45_v3  ;;  %242 = vmatpush3.bf16.msra.mxu1 %v267_v5  ;;  %v272_v10 = vld [vmem:[#allocation2 + $0x28] sm:$0xff]   ;;  %v273_v11 = vld [vmem:[#allocation2 + $0x30] sm:$0xff]   ;;  %v274_v12 = vld [vmem:[#allocation2 + $0x38] sm:$0xff]   ;;  %p302_p9 = scmp.lt.s32.totalorder %s207_s4, %s207_s4 }
  0x17   :  { %243 = vmatprep.subr.bf16.mxu1 %v326_v0  ;;  %v33_v15 = vld [vmem:[%s383_s1] sm:$0x4]  ;;  %v37_v17 = vsub.s32 4, %v36_v14  ;;  %v105_v26 = vld [vmem:[#allocation2 + $0x40] sm:$0x1]  ;;  %v109_v28 = vsub.s32 0, %v36_v14 }
  0x18   :  { %v34_v16 = vunpack.c.l.bf16 %v33_v15  ;;  %v106_v27 = vunpack.c.l.bf16 %v105_v26  ;;  %s297_s1 = scalar_lea.vmem %s207_s4, 128 }
  0x19   :  { %238 = vmatmul.mubr.msk.bf16.vlgmr.msra.gmra.mrb[0].mxu0 %vm39_vm2, %v31_v4  ;;  %p298_p8 = scmp.ne.s32.totalorder %s207_s4, %s297_s1  ;;  %p303_p10 = scmp.lt.s32.totalorder %s297_s1, %s297_s1 }
  0x1a   :  { %244 = vmatpush3.bf16.msra.mxu1 %v268_v6  ;;  %v38_v18 = vrot.slane %v34_v16, %v37_v17  ;;  %v110_v29 = vrot.slane %v106_v27, %v109_v28 }
  0x1b   :  { %245 = vmatprep.subr.bf16.mxu1 %v326_v0  ;;  %p304_p11 = por %p303_p10, %p302_p9 }
  0x1d   :  { %p305_p12 = pnand %p304_p11, %p298_p8 }
  0x1e   :  { %246 = vmatpush3.bf16.msra.mxu1 %v269_v7 }
  0x1f   :  { %247 = vmatprep.subr.bf16.mxu1 %v326_v0 }
  0x22   :  { %248 = vmatpush3.bf16.msra.mxu1 %v270_v8 }
  0x23   :  { %249 = vmatprep.subr.bf16.mxu1 %v326_v0 }
  0x26   :  { %250 = vmatpush3.bf16.msra.mxu1 %v271_v9 }
  0x27   :  { %251 = vmatprep.subr.bf16.mxu1 %v326_v0 }
  0x2a   :  { %252 = vmatpush3.bf16.msra.mxu1 %v272_v10 }
  0x2b   :  { %253 = vmatprep.subr.bf16.mxu1 %v326_v0 }
  0x2e   :  { %254 = vmatpush3.bf16.msra.mxu1 %v273_v11 }
  0x2f   :  { %255 = vmatprep.subr.bf16.mxu1 %v326_v0 }
  0x32   :  { %256 = vmatpush3.bf16.msra.mxu1 %v274_v12 }
  0xec   :  { %v81_v19 = vpop.f32.mrb[0].mxu0 }
  0xed   :  { %v82_v20 = vadd.f32 %v81_v19, %v38_v18  ;;  %v239_v21 = vpop.f32.mrb[1].mxu0 }
  0xee   :  { %v84_v22 = vpop.f32.mrb[2].mxu0 }
  0xef   :  { %v87_v23 = vmax.f32 %v82_v20, 0.0  ;;  %v240_v24 = vpop.f32.mrb[3].mxu0 }
  0xf1   :  { %v88_v25 = vpack.c.bf16 %v87_v23, %v87_v23 }
  0xf3   :  { %258 = vmatmul.mubr.bf16.vlgmr.msra.gmra.mrb[0].mxu1 %v88_v25 }
 0x1c6   :  { %v193_v30 = vpop.f32.mrb[0].mxu1 }
 0x1c7   :  { %v194_v31 = vadd.f32 %v193_v30, %v110_v29  ;;  %v259_v32 = vpop.f32.mrb[1].mxu1 }
 0x1c8   :  { %v196_v33 = vpop.f32.mrb[2].mxu1 }
 0x1c9   :  { %199 = vst [vmem:[#allocation5] sm:$0xff] %v194_v31  ;;  %v260_v34 = vpop.f32.mrb[3].mxu1 }
 0x1ca   :  { %308 = shalt.err (!%p305_p12)
}
 0x1cb   :  { %s309_s7 = scalar_lea.hbm %s385_s3, 128 }
 0x1cc   :  { %p310_p13 = scmp.ne.s32.totalorder %s385_s3, %s309_s7  ;;  %p313_p0 = scmp.lt.u32.totalorder %s309_s7, %s385_s3 }
 0x1ce   :  { %p315_p1 = pnand %p313_p0, %p310_p13 }
 0x1d0   :  { %318 = shalt.err (!%p315_p1)
}
 0x1d1   :  { %209 = dma.vmem_to_hbm [thread:$0]  %s207_s4, 128, %s385_s3, [#allocation4]  }
 0x1d2   :  { %321 = dma.done.wait [#allocation4], 128  }
 0x1d3   :  { %322 = vsyncadd [#allocation4], 4294967168 }
 0x1d4   :  { %213 = vsyncpa [#allocation3], 1 }
 0x1d5   :  { %214 = vsyncpa [#allocation4], 1 }

</bundles_post_ra>
